<compile_context>
chip_gen: v7x
topology: tpu7x:2x2x1
jax: 0.10.0
libtpu: 0.0.40
codegen_flags: <defaults>
</compile_context>

<pallas_src>
import jax
import jax.numpy as jnp
from jax.experimental import pallas as pl
from jax.experimental.pallas import tpu as pltpu

INPUT_DIM = 28 * 28     # 784
NUM_CLASSES = 1


def _matvec_bias_kernel(x_ref, w_ref, b_ref, o_ref):
    # x_ref: [TB, D] VMEM (streamed tile)   w_ref: [1, D] VMEM (resident)
    # b_ref: [1, 1] SMEM scalar             o_ref: [TB, 1] VMEM (f32)
    x = x_ref[...].astype(jnp.float32)   # no-op for f32; widens bf16 storage
    w = w_ref[...].astype(jnp.float32)   # [1, D], broadcast down TB sublanes
    acc = jnp.sum(x * w, axis=-1, keepdims=True)   # VPU mul + XLU lane reduce
    o_ref[...] = acc + b_ref[0, 0]


def logistic_regression_forward(x, weight, bias, *, block_b=2048,
                                stream_dtype=None):
    """x: [B, input_dim]; weight: [num_classes, input_dim]; bias: [num_classes].

    Returns [B, num_classes] float32 == x @ weight.T + bias (nn.Linear forward).
    stream_dtype: optional storage dtype (e.g. jnp.bfloat16) for x/weight HBM
    streaming; accumulation and output stay float32.
    """
    B, D = x.shape
    C, D_w = weight.shape
    assert D_w == D and C == 1, "kernel is specialized for num_classes == 1"

    if stream_dtype is not None:
        x = x.astype(stream_dtype)
        weight = weight.astype(stream_dtype)

    # Tile selection: no padding, no HBM copy.  Either one full-batch block or
    # block_b-row blocks with a ragged (Pallas-masked) last block.
    if B <= block_b:
        tb = B
    else:
        assert block_b % 8 == 0, "block_b must be a multiple of 8 (sublanes)"
        tb = block_b
    grid = (pl.cdiv(B, tb),)

    w_row = weight.reshape(1, D)                     # [1, D], VMEM-resident
    b_smem = bias.reshape(1, 1).astype(jnp.float32)  # scalar, lives in SMEM

    out = pl.pallas_call(
        _matvec_bias_kernel,
        out_shape=jax.ShapeDtypeStruct((B, C), jnp.float32),
        grid=grid,
        in_specs=[
            pl.BlockSpec((tb, D), lambda i: (i, 0)),            # stream x tiles
            pl.BlockSpec((1, D), lambda i: (0, 0)),             # weight row resident
            pl.BlockSpec(memory_space=pltpu.MemorySpace.SMEM),  # bias scalar in SMEM
        ],
        out_specs=pl.BlockSpec((tb, C), lambda i: (i, 0)),
        compiler_params=pltpu.CompilerParams(
            dimension_semantics=("parallel",),   # independent batch rows
            vmem_limit_bytes=48 * 1024 * 1024,   # > v5e/v6e scoped defaults, < v7x 64 MiB
        ),
    )(x, w_row, b_smem)
    return out


if __name__ == "__main__":
    key = jax.random.PRNGKey(0)
    k_x, k_w, k_b, k_x2 = jax.random.split(key, 4)

    # Deterministic nn.Linear-style init: uniform(-1/sqrt(D), 1/sqrt(D))
    bound = 1.0 / jnp.sqrt(float(INPUT_DIM))
    weight = jax.random.uniform(
        k_w, (NUM_CLASSES, INPUT_DIM), minval=-bound, maxval=bound, dtype=jnp.float32
    )
    bias = jax.random.uniform(
        k_b, (NUM_CLASSES,), minval=-bound, maxval=bound, dtype=jnp.float32
    )

    # 1) Small batch (single full-batch block, no raggedness), f32 streaming.
    B1 = 8
    x1 = jax.random.normal(k_x, (B1, INPUT_DIM), dtype=jnp.float32)
    out1 = jax.block_until_ready(logistic_regression_forward(x1, weight, bias))
    ref1 = x1 @ weight.T + bias
    assert out1.shape == (B1, NUM_CLASSES)
    assert jnp.allclose(out1, ref1, atol=1e-4, rtol=1e-4)

    # 2) Ragged multi-step grid with no padding copy (300 rows, 128-row tiles
    #    -> 3 grid steps, last block masked by Pallas), f32 streaming.
    B2 = 300
    x2 = jax.random.normal(k_x2, (B2, INPUT_DIM), dtype=jnp.float32)
    out2 = jax.block_until_ready(
        logistic_regression_forward(x2, weight, bias, block_b=128)
    )
    ref2 = x2 @ weight.T + bias
    assert out2.shape == (B2, NUM_CLASSES)
    assert jnp.allclose(out2, ref2, atol=1e-4, rtol=1e-4)

    # 3) bf16 streaming path (halves HBM traffic; f32 accumulation inside).
    out3 = jax.block_until_ready(
        logistic_regression_forward(
            x2, weight, bias, block_b=128, stream_dtype=jnp.bfloat16
        )
    )
    assert out3.shape == (B2, NUM_CLASSES)
    assert jnp.allclose(out3, ref2, atol=5e-2, rtol=5e-2)

    print("KERNEL_OK")
</pallas_src>

<mosaic_0001>
module attributes {stable_mosaic.version = 11 : i64} {
  func.func @_matvec_bias_kernel(%arg0: i32, %arg1: memref<8x784xf32, #tpu.memory_space<vmem>>, %arg2: memref<1x784xf32, #tpu.memory_space<vmem>>, %arg3: memref<1x1xf32, #tpu.memory_space<smem>>, %arg4: memref<8x1xf32, #tpu.memory_space<vmem>>) attributes {dimension_semantics = [#tpu.dimension_semantics<parallel>], iteration_bounds = array<i64: 1>, scalar_prefetch = 0 : i64, scratch_operands = 0 : i64, tpu.core_type = #tpu.core_type<tc>, window_params = [{transform_indices = @transform_0, window_bounds = array<i64: 8, 784>}, {pipeline_mode = #tpu.pipeline_mode<synchronous>, transform_indices = @transform_1, window_bounds = array<i64: 1, 784>}, {transform_indices = @transform_2, window_bounds = array<i64: 1, 1>}, {transform_indices = @transform_3, window_bounds = array<i64: 8, 1>}]} {
    %c0 = arith.constant 0 : index
    %c0_0 = arith.constant 0 : index
    %0 = vector.load %arg1[%c0, %c0_0] : memref<8x784xf32, #tpu.memory_space<vmem>>, vector<8x784xf32>
    %c0_1 = arith.constant 0 : index
    %c0_2 = arith.constant 0 : index
    %1 = vector.load %arg2[%c0_1, %c0_2] : memref<1x784xf32, #tpu.memory_space<vmem>>, vector<1x784xf32>
    %2 = vector.broadcast %1 : vector<1x784xf32> to vector<8x784xf32>
    %3 = arith.mulf %0, %2 : vector<8x784xf32>
    %cst = arith.constant dense<0.000000e+00> : vector<8xf32>
    %4 = vector.multi_reduction <add>, %3, %cst [1] : vector<8x784xf32> to vector<8xf32>
    %5 = vector.shape_cast %4 : vector<8xf32> to vector<8x1xf32>
    %c0_3 = arith.constant 0 : index
    %c0_4 = arith.constant 0 : index
    %6 = memref.load %arg3[%c0_3, %c0_4] : memref<1x1xf32, #tpu.memory_space<smem>>
    %7 = vector.broadcast %6 : f32 to vector<8x1xf32>
    %8 = arith.addf %5, %7 : vector<8x1xf32>
    %c0_5 = arith.constant 0 : index
    %c0_6 = arith.constant 0 : index
    %9 = vector.load %arg4[%c0_5, %c0_6] : memref<8x1xf32, #tpu.memory_space<vmem>>, vector<8x1xf32>
    tpu.vector_store %arg4[%c0_5, %c0_6], %8 {strides = array<i32>} : memref<8x1xf32, #tpu.memory_space<vmem>>, vector<8x1xf32>,
    return
  }
  func.func @transform_0(%arg0: i32) -> (i32, i32) {
    %c0_i32 = arith.constant 0 : i32
    %c0_i32_0 = arith.constant 0 : i32
    return %arg0, %c0_i32 : i32, i32
  }
  func.func @transform_1(%arg0: i32) -> (i32, i32) {
    %c0_i32 = arith.constant 0 : i32
    %c0_i32_0 = arith.constant 0 : i32
    %c0_i32_1 = arith.constant 0 : i32
    return %c0_i32, %c0_i32_0 : i32, i32
  }
  func.func @transform_2(%arg0: i32) -> (i32, i32) {
    %c0_i32 = arith.constant 0 : i32
    %c0_i32_0 = arith.constant 0 : i32
    %c0_i32_1 = arith.constant 0 : i32
    return %c0_i32, %c0_i32_0 : i32, i32
  }
  func.func @transform_3(%arg0: i32) -> (i32, i32) {
    %c0_i32 = arith.constant 0 : i32
    %c0_i32_0 = arith.constant 0 : i32
    return %arg0, %c0_i32 : i32, i32
  }
}

</mosaic_0001>

<bundles_post_ra>
// kernel: tpu_custom_call.1
= control target key start
LH: loop header
LB: loop body
LE: loop exit
PB: predicated region body
PF: predicated region fallthrough
CT: control target
= control target key end

     0   :  { %9 = vsyncpa [#allocation4], 0  ;;  %s123_s12 = smov [#allocation3]   ;;  %s165_s0 = inlined_call_operand.hbm [shape: f32[8,784], index: 0, kind: input, shape index: {}]   ;;  %s166_s1 = inlined_call_operand.vmem [shape: f32[1,784], index: 1, kind: input, shape index: {}]   ;;  %s167_s2 = inlined_call_operand.<no memory space> [shape: f32[1,1], index: 2, kind: input, shape index: {}]   ;;  %s168_s3 = inlined_call_operand.vmem [shape: f32[8,1], index: 3, kind: output, shape index: {}]  }
   0x1   :  { %s16_s13 = sshll.u32 %s123_s12, 4  ;;  %s99_s16 = scalar_lea.hbm %s165_s0, 896  ;;  %s17_s13 = int_to_ptr.vmem [resolvable:$true] %s16_s13 }
   0x2   :  { %p100_p0 = scmp.ne.s32.totalorder %s165_s0, %s99_s16  ;;  %p103_p1 = scmp.lt.u32.totalorder %s99_s16, %s165_s0 }
   0x4   :  { %p105_p2 = pnand %p103_p1, %p100_p0 }
   0x6   :  { %108 = shalt.err (!%p105_p2)
}
   0x7   :  { %s109_s21 = scalar_lea.vmem %s17_s13, 896  ;;  %p114_p4 = scmp.lt.s32.totalorder %s17_s13, %s17_s13 }
   0x8   :  { %p110_p3 = scmp.ne.s32.totalorder %s17_s13, %s109_s21  ;;  %p115_p5 = scmp.lt.s32.totalorder %s109_s21, %s109_s21 }
   0xa   :  { %p116_p6 = por %p115_p5, %p114_p4 }
   0xc   :  { %p117_p7 = pnand %p116_p6, %p110_p3 }
   0xe   :  { %120 = shalt.err (!%p117_p7)
}
   0xf   :  { %19 = dma.hbm_to_vmem [thread:$0]  %s165_s0, 896, %s17_s13, [#allocation4]  }
  0x10   :  { %121 = dma.done.wait [#allocation4], 896  }
  0x11   :  { %122 = vsyncadd [#allocation4], 4294966400  ;;  %v36_v0 = vlaneseq  ;;  %v27_v6 = vld [vmem:[#allocation3] sm:$0xff]  ;;  %v28_v8 = vld [vmem:[#allocation3 + $0x8] sm:$0xff]  ;;  %vm83_vm0 = vcmask 130048   ;;  %v89_v38 = vstv %s167_s2  ;;  %vm91_vm1 = vcmask 7168  }
  0x12   :  { %v29_v9 = vld [vmem:[#allocation3 + $0x10] sm:$0xff]  ;;  %v34_v10 = vld [vmem:[%s166_s1] sm:$0x7f]  ;;  %v30_v17 = vld [vmem:[#allocation3 + $0x18] sm:$0xff] }
  0x13   :  { %v37_v1 = vshrl.u32 %v36_v0, 7  ;;  %v31_v22 = vld [vmem:[#allocation3 + $0x20] sm:$0xff]  ;;  %v33_v24 = vld [vmem:[#allocation3 + $0x30] sm:$0xff]  ;;  %v32_v28 = vld [vmem:[#allocation3 + $0x28] sm:$0xff] }
  0x15   :  { %v38_v2 = vsub.s32 0, %v37_v1  ;;  %v42_v3 = vsub.s32 1, %v37_v1  ;;  %v46_v4 = vsub.s32 2, %v37_v1  ;;  %v50_v5 = vsub.s32 3, %v37_v1 }
  0x16   :  { %v54_v7 = vsub.s32 4, %v37_v1  ;;  %v58_v11 = vsub.s32 5, %v37_v1  ;;  %v62_v12 = vsub.s32 6, %v37_v1 }
  0x17   :  { %v39_v13 = vrot.slane %v34_v10, %v38_v2  ;;  %v43_v14 = vrot.slane %v34_v10, %v42_v3  ;;  %v47_v15 = vrot.slane %v34_v10, %v46_v4  ;;  %v51_v16 = vrot.slane %v34_v10, %v50_v5 }
  0x18   :  { %v55_v18 = vrot.slane %v34_v10, %v54_v7  ;;  %v63_v23 = vrot.slane %v34_v10, %v62_v12  ;;  %v59_v25 = vrot.slane %v34_v10, %v58_v11 }
  0x19   :  { %v71_v19 = vmul.f32 %v39_v13, %v27_v6  ;;  %v72_v20 = vmul.f32 %v43_v14, %v28_v8  ;;  %v73_v21 = vmul.f32 %v47_v15, %v29_v9  ;;  %v74_v26 = vmul.f32 %v51_v16, %v30_v17 }
  0x1a   :  { %v75_v29 = vmul.f32 %v55_v18, %v31_v22  ;;  %v77_v31 = vmul.f32 %v63_v23, %v33_v24  ;;  %v76_v32 = vmul.f32 %v59_v25, %v32_v28 }
  0x1b   :  { %v78_v27 = vadd.f32 %v72_v20, %v71_v19 }
  0x1c   :  { %v84_v35 = vsel %vm83_vm0, %v77_v31, 0.0 }
  0x1d   :  { %v79_v30 = vadd.f32 %v78_v27, %v73_v21 }
  0x1f   :  { %v80_v33 = vadd.f32 %v79_v30, %v74_v26 }
  0x21   :  { %v81_v34 = vadd.f32 %v80_v33, %v75_v29 }
  0x23   :  { %v82_v36 = vadd.f32 %v81_v34, %v76_v32 }
  0x25   :  { %v85_v37 = vadd.f32 %v84_v35, %v82_v36 }
  0x27   :  { %86 = vadd.xlane.f32.xlu0 %v85_v37 }
  0xb4   :  { %v87_v39 = vpop.xlane.xlu0 %86 }
  0xb5   :  { %v90_v40 = vadd.f32 %v89_v38, %v87_v39 }
  0xb7   :  { %92 = vst.msk [vmem:[%s168_s3] sm:$0xff] %vm91_vm1, %v90_v40 }
  0xb8   :  { %97 = vsyncpa [#allocation4], 1 }

</bundles_post_ra>
